<compile_context>
chip_gen: v5e
topology: v5e:2x2
jax: 0.10.0
libtpu: 0.0.40
codegen_flags: <defaults>
</compile_context>

<pallas_src>
import jax
import jax.numpy as jnp
from jax.experimental import pallas as pl
from jax.experimental.pallas import tpu as pltpu


def _round_up(x, m):
    return (x + m - 1) // m * m


def gnn_graph_head_2cell(x1, batch1, x2, batch2, w, b, num_graphs):
    """pred = Linear(concat(mean_pool(x1, batch1), mean_pool(x2, batch2)))."""
    N1, D = x1.shape
    N2, D2 = x2.shape
    assert D == D2
    two_d = 2 * D
    dim_out = w.shape[1]
    assert w.shape[0] == two_d

    G = num_graphs
    Gp = _round_up(max(G, 1), 8)            # sublane-aligned graph rows
    Fp = _round_up(two_d + 2, 128)          # lane-aligned feature slab (+2 count cols)
    Op = _round_up(dim_out, 128)            # lane-dense output width
    N = N1 + N2
    TN = min(_round_up(N, 128), 2048)       # node tile (contraction chunk)
    Np = _round_up(N, TN)
    nt = Np // TN

    f32 = jnp.float32
    # NOTE: if upstream features/weights are bf16, drop these casts and feed
    # bf16 straight to the MXU (accumulation stays f32 via preferred_element_type).
    x1f = x1.astype(f32)
    x2f = x2.astype(f32)

    # Augmented node-feature slab:
    #   cols [0, D)   : cell-1 features (zero on cell-2 rows)
    #   cols [D, 2D)  : cell-2 features (zero on cell-1 rows)
    #   col  2D       : 1.0 on cell-1 rows  -> pooled => per-graph cell-1 count
    #   col  2D+1     : 1.0 on cell-2 rows  -> pooled => per-graph cell-2 count
    #   cols >= 2D+2 and padded rows: zero
    xa1 = jnp.concatenate(
        [x1f, jnp.zeros((N1, D), f32), jnp.ones((N1, 1), f32), jnp.zeros((N1, 1), f32)],
        axis=1)
    xa2 = jnp.concatenate(
        [jnp.zeros((N2, D), f32), x2f, jnp.zeros((N2, 1), f32), jnp.ones((N2, 1), f32)],
        axis=1)
    x_aug = jnp.concatenate([xa1, xa2], axis=0)
    x_aug = jnp.pad(x_aug, ((0, Np - N), (0, Fp - (two_d + 2))))        # [Np, Fp]

    # Combined node -> row-id vector: cell-1 nodes keep their graph id,
    # cell-2 node ids are offset by Gp, padded nodes get a sentinel (-1)
    # so they never match any graph row.
    ids = jnp.concatenate([
        batch1.astype(jnp.int32),
        batch2.astype(jnp.int32) + Gp,
        jnp.full((Np - N,), -1, dtype=jnp.int32),
    ]).reshape(1, Np)

    # Zero-padded projection weight / bias: rows >= 2D (incl. the count columns)
    # are zero, so the count/pad lanes of the pooled slab never leak into the output.
    w_pad = jnp.zeros((Fp, Op), f32).at[:two_d, :dim_out].set(w.astype(f32))
    b_pad = jnp.zeros((1, Op), f32).at[0, :dim_out].set(b.astype(f32))

    def kernel(ids_ref, x_ref, w_ref, b_ref, out_ref, acc_ref):
        t = pl.program_id(0)

        @pl.when(t == 0)
        def _init():
            acc_ref[...] = jnp.zeros_like(acc_ref)

        # One fused pooling matmul per node chunk: rows of `mask` select this
        # graph's nodes from BOTH cells; the augmented feature layout keeps the
        # two cells in disjoint lane ranges, so no cross-talk and no concat.
        gids = jax.lax.broadcasted_iota(jnp.int32, (Gp, TN), 0)
        node_ids = ids_ref[...]                                     # [1, TN]
        sel = (node_ids == gids) | (node_ids == gids + Gp)          # [Gp, TN]
        mask = sel.astype(f32)
        acc_ref[...] += jnp.dot(mask, x_ref[...],
                                preferred_element_type=f32)         # [Gp, Fp] (MXU)

        @pl.when(t == nt - 1)
        def _finalize():
            sums = acc_ref[...]                                     # [Gp, Fp]
            # Counts came out of the same matmul (indicator columns).
            c1 = jnp.maximum(sums[:, two_d:two_d + 1], 1.0)         # [Gp, 1]
            c2 = jnp.maximum(sums[:, two_d + 1:two_d + 2], 1.0)     # [Gp, 1]
            lane = jax.lax.broadcasted_iota(jnp.int32, (Gp, Fp), 1)
            inv = jnp.where(lane < D, 1.0 / c1, 1.0 / c2)           # exact recip
            cat = sums * inv                                        # [Gp, Fp] means
            out = jnp.dot(cat, w_ref[...],
                          preferred_element_type=f32) + b_ref[...]  # [Gp, Op] (MXU)
            out_ref[...] = out.astype(out_ref.dtype)

    pred_pad = pl.pallas_call(
        kernel,
        out_shape=jax.ShapeDtypeStruct((Gp, Op), f32),
        grid=(nt,),
        in_specs=[
            pl.BlockSpec((1, TN), lambda t: (0, t)),      # node ids chunk
            pl.BlockSpec((TN, Fp), lambda t: (t, 0)),     # node feature chunk
            pl.BlockSpec((Fp, Op), lambda t: (0, 0)),     # weight (resident)
            pl.BlockSpec((1, Op), lambda t: (0, 0)),      # bias (resident)
        ],
        out_specs=pl.BlockSpec((Gp, Op), lambda t: (0, 0)),
        scratch_shapes=[pltpu.VMEM((Gp, Fp), f32)],
        compiler_params=pltpu.CompilerParams(
            dimension_semantics=("arbitrary",)),          # node axis is a reduction
        # TODO(synk): for many independent graph batches, add a leading
        # "parallel" grid axis to use v7x's second TensorCore.
    )(ids, x_aug, w_pad, b_pad)

    return pred_pad[:G, :dim_out]


def _reference(x1, batch1, x2, batch2, w, b, num_graphs):
    def pool(x, batch):
        oh = (batch[None, :] == jnp.arange(num_graphs)[:, None]).astype(jnp.float32)
        cnt = jnp.maximum(oh.sum(axis=1, keepdims=True), 1.0)
        return (oh @ x) / cnt
    cat = jnp.concatenate([pool(x1, batch1), pool(x2, batch2)], axis=-1)
    return cat @ w + b[None, :]


if __name__ == "__main__":
    key = jax.random.PRNGKey(0)
    k1, k2, k3, k4, kw, ky = jax.random.split(key, 6)

    dim_in = 32        # per-cell node feature dim
    dim_out = 8
    num_graphs = 4
    N1, N2 = 24, 20    # total nodes across the two batched cell complexes

    x1 = jax.random.normal(k1, (N1, dim_in), dtype=jnp.float32)
    x2 = jax.random.normal(k2, (N2, dim_in), dtype=jnp.float32)
    # node -> graph assignment (sorted, as PyG produces; kernel doesn't need sortedness)
    batch1 = jnp.sort(jax.random.randint(k3, (N1,), 0, num_graphs)).astype(jnp.int32)
    batch2 = jnp.sort(jax.random.randint(k4, (N2,), 0, num_graphs)).astype(jnp.int32)

    # layer_post_mp: single Linear(2*dim_in, dim_out) with bias, no activation
    # (cfg.gnn.layers_post_mp = 1, has_act=False, has_bias=True)
    w = jax.random.normal(kw, (2 * dim_in, dim_out), dtype=jnp.float32) * (
        1.0 / jnp.sqrt(2.0 * dim_in))
    bias = jnp.zeros((dim_out,), dtype=jnp.float32)

    # labels (batch.y) are passed through untouched by the head
    y = jax.random.randint(ky, (num_graphs,), 0, 2).astype(jnp.int32)

    pred = gnn_graph_head_2cell(x1, batch1, x2, batch2, w, bias, num_graphs)
    label = y  # _apply_index: (batch.graph_feature, batch.y)
    jax.block_until_ready(pred)

    ref = _reference(x1, batch1, x2, batch2, w, bias, num_graphs)
    assert pred.shape == (num_graphs, dim_out)
    assert jnp.allclose(pred, ref, atol=1e-5, rtol=1e-5), "mismatch vs reference"

    print("KERNEL_OK")
</pallas_src>

<mosaic_0001>
module attributes {stable_mosaic.version = 11 : i64} {
  func.func @kernel(%arg0: i32, %arg1: memref<1x128xi32, #tpu.memory_space<vmem>>, %arg2: memref<128x128xf32, #tpu.memory_space<vmem>>, %arg3: memref<128x128xf32, #tpu.memory_space<vmem>>, %arg4: memref<1x128xf32, #tpu.memory_space<vmem>>, %arg5: memref<8x128xf32, #tpu.memory_space<vmem>>, %arg6: memref<8x128xf32, #tpu.memory_space<vmem>>) attributes {dimension_semantics = [#tpu.dimension_semantics<arbitrary>], iteration_bounds = array<i64: 1>, scalar_prefetch = 0 : i64, scratch_operands = 1 : i64, tpu.core_type = #tpu.core_type<tc>, window_params = [{transform_indices = @transform_0, window_bounds = array<i64: 1, 128>}, {transform_indices = @transform_1, window_bounds = array<i64: 128, 128>}, {pipeline_mode = #tpu.pipeline_mode<synchronous>, transform_indices = @transform_2, window_bounds = array<i64: 128, 128>}, {pipeline_mode = #tpu.pipeline_mode<synchronous>, transform_indices = @transform_3, window_bounds = array<i64: 1, 128>}, {pipeline_mode = #tpu.pipeline_mode<synchronous>, transform_indices = @transform_4, window_bounds = array<i64: 8, 128>}]} {
    %c0_i32 = arith.constant 0 : i32
    %0 = arith.cmpi eq, %arg0, %c0_i32 : i32
    %1 = arith.extui %0 : i1 to i32
    %c0_i32_0 = arith.constant 0 : i32
    %2 = arith.cmpi ne, %1, %c0_i32_0 : i32
    scf.if %2 {
      %cst_10 = arith.constant 0.000000e+00 : f32
      %22 = vector.broadcast %cst_10 : f32 to vector<8x128xf32>
      %c0_11 = arith.constant 0 : index
      %c0_12 = arith.constant 0 : index
      %23 = vector.load %arg6[%c0_11, %c0_12] : memref<8x128xf32, #tpu.memory_space<vmem>>, vector<8x128xf32>
      tpu.vector_store %arg6[%c0_11, %c0_12], %22 {strides = array<i32>} : memref<8x128xf32, #tpu.memory_space<vmem>>, vector<8x128xf32>,
    } else {
    }
    %3 = tpu.iota {dimensions = array<i32: 0>} : vector<8x128xi32>
    %c0 = arith.constant 0 : index
    %c0_1 = arith.constant 0 : index
    %4 = vector.load %arg1[%c0, %c0_1] : memref<1x128xi32, #tpu.memory_space<vmem>>, vector<1x128xi32>
    %5 = vector.broadcast %4 : vector<1x128xi32> to vector<8x128xi32>
    %6 = arith.cmpi eq, %5, %3 : vector<8x128xi32>
    %c8_i32 = arith.constant 8 : i32
    %7 = vector.broadcast %c8_i32 : i32 to vector<8x128xi32>
    %8 = arith.addi %3, %7 : vector<8x128xi32>
    %9 = vector.broadcast %4 : vector<1x128xi32> to vector<8x128xi32>
    %10 = arith.cmpi eq, %9, %8 : vector<8x128xi32>
    %11 = arith.ori %6, %10 : vector<8x128xi1>
    %12 = arith.extui %11 : vector<8x128xi1> to vector<8x128xi32>
    %13 = arith.sitofp %12 : vector<8x128xi32> to vector<8x128xf32>
    %c0_2 = arith.constant 0 : index
    %c0_3 = arith.constant 0 : index
    %14 = vector.load %arg6[%c0_2, %c0_3] : memref<8x128xf32, #tpu.memory_space<vmem>>, vector<8x128xf32>
    %c0_4 = arith.constant 0 : index
    %c0_5 = arith.constant 0 : index
    %15 = vector.load %arg2[%c0_4, %c0_5] : memref<128x128xf32, #tpu.memory_space<vmem>>, vector<128x128xf32>
    %cst = arith.constant dense<0.000000e+00> : vector<8x128xf32>
    %16 = tpu.matmul %13, %15, %cst {dimension_numbers = #tpu.dot_dimension_numbers<[1], [0], [0], [1], [0, 0, 1, 1], [], []>} : vector<8x128xf32>, vector<128x128xf32>, vector<8x128xf32> -> vector<8x128xf32>
    %17 = arith.addf %14, %16 : vector<8x128xf32>
    %c0_6 = arith.constant 0 : index
    %c0_7 = arith.constant 0 : index
    %18 = vector.load %arg6[%c0_6, %c0_7] : memref<8x128xf32, #tpu.memory_space<vmem>>, vector<8x128xf32>
    tpu.vector_store %arg6[%c0_6, %c0_7], %17 {strides = array<i32>} : memref<8x128xf32, #tpu.memory_space<vmem>>, vector<8x128xf32>,
    %c0_i32_8 = arith.constant 0 : i32
    %19 = arith.cmpi eq, %arg0, %c0_i32_8 : i32
    %20 = arith.extui %19 : i1 to i32
    %c0_i32_9 = arith.constant 0 : i32
    %21 = arith.cmpi ne, %20, %c0_i32_9 : i32
    scf.if %21 {
      %c0_10 = arith.constant 0 : index
      %c0_11 = arith.constant 0 : index
      %22 = vector.load %arg6[%c0_10, %c0_11] : memref<8x128xf32, #tpu.memory_space<vmem>>, vector<8x128xf32>
      %23 = vector.extract_strided_slice %22 {offsets = [0, 64], sizes = [8, 1], strides = [1, 1]} : vector<8x128xf32> to vector<8x1xf32>
      %cst_12 = arith.constant 1.000000e+00 : f32
      %24 = vector.broadcast %cst_12 : f32 to vector<8x1xf32>
      %25 = arith.maximumf %23, %24 : vector<8x1xf32>
      %26 = vector.extract_strided_slice %22 {offsets = [0, 65], sizes = [8, 1], strides = [1, 1]} : vector<8x128xf32> to vector<8x1xf32>
      %cst_13 = arith.constant 1.000000e+00 : f32
      %27 = vector.broadcast %cst_13 : f32 to vector<8x1xf32>
      %28 = arith.maximumf %26, %27 : vector<8x1xf32>
      %29 = tpu.iota {dimensions = array<i32: 1>} : vector<8x128xi32>
      %c32_i32 = arith.constant 32 : i32
      %30 = vector.broadcast %c32_i32 : i32 to vector<8x128xi32>
      %31 = arith.cmpi slt, %29, %30 : vector<8x128xi32>
      %cst_14 = arith.constant 1.000000e+00 : f32
      %32 = vector.broadcast %cst_14 : f32 to vector<8x1xf32>
      %33 = arith.divf %32, %25 : vector<8x1xf32>
      %cst_15 = arith.constant 1.000000e+00 : f32
      %34 = vector.broadcast %cst_15 : f32 to vector<8x1xf32>
      %35 = arith.divf %34, %28 : vector<8x1xf32>
      %36 = vector.shape_cast %33 : vector<8x1xf32> to vector<8x1xf32>
      %37 = vector.broadcast %36 : vector<8x1xf32> to vector<8x128xf32>
      %38 = vector.shape_cast %35 : vector<8x1xf32> to vector<8x1xf32>
      %39 = vector.broadcast %38 : vector<8x1xf32> to vector<8x128xf32>
      %40 = arith.select %31, %37, %39 : vector<8x128xi1>, vector<8x128xf32>
      %41 = arith.mulf %22, %40 : vector<8x128xf32>
      %c0_16 = arith.constant 0 : index
      %c0_17 = arith.constant 0 : index
      %42 = vector.load %arg3[%c0_16, %c0_17] : memref<128x128xf32, #tpu.memory_space<vmem>>, vector<128x128xf32>
      %cst_18 = arith.constant dense<0.000000e+00> : vector<8x128xf32>
      %43 = tpu.matmul %41, %42, %cst_18 {dimension_numbers = #tpu.dot_dimension_numbers<[1], [0], [0], [1], [0, 0, 1, 1], [], []>} : vector<8x128xf32>, vector<128x128xf32>, vector<8x128xf32> -> vector<8x128xf32>
      %c0_19 = arith.constant 0 : index
      %c0_20 = arith.constant 0 : index
      %44 = vector.load %arg4[%c0_19, %c0_20] : memref<1x128xf32, #tpu.memory_space<vmem>>, vector<1x128xf32>
      %45 = vector.broadcast %44 : vector<1x128xf32> to vector<8x128xf32>
      %46 = arith.addf %43, %45 : vector<8x128xf32>
      %c0_21 = arith.constant 0 : index
      %c0_22 = arith.constant 0 : index
      %47 = vector.load %arg5[%c0_21, %c0_22] : memref<8x128xf32, #tpu.memory_space<vmem>>, vector<8x128xf32>
      tpu.vector_store %arg5[%c0_21, %c0_22], %46 {strides = array<i32>} : memref<8x128xf32, #tpu.memory_space<vmem>>, vector<8x128xf32>,
    } else {
    }
    return
  }
  func.func @transform_0(%arg0: i32) -> (i32, i32) {
    %c0_i32 = arith.constant 0 : i32
    %c0_i32_0 = arith.constant 0 : i32
    return %c0_i32, %arg0 : i32, i32
  }
  func.func @transform_1(%arg0: i32) -> (i32, i32) {
    %c0_i32 = arith.constant 0 : i32
    %c0_i32_0 = arith.constant 0 : i32
    return %arg0, %c0_i32 : i32, i32
  }
  func.func @transform_2(%arg0: i32) -> (i32, i32) {
    %c0_i32 = arith.constant 0 : i32
    %c0_i32_0 = arith.constant 0 : i32
    %c0_i32_1 = arith.constant 0 : i32
    return %c0_i32, %c0_i32_0 : i32, i32
  }
  func.func @transform_3(%arg0: i32) -> (i32, i32) {
    %c0_i32 = arith.constant 0 : i32
    %c0_i32_0 = arith.constant 0 : i32
    %c0_i32_1 = arith.constant 0 : i32
    return %c0_i32, %c0_i32_0 : i32, i32
  }
  func.func @transform_4(%arg0: i32) -> (i32, i32) {
    %c0_i32 = arith.constant 0 : i32
    %c0_i32_0 = arith.constant 0 : i32
    %c0_i32_1 = arith.constant 0 : i32
    return %c0_i32, %c0_i32_0 : i32, i32
  }
}

</mosaic_0001>

<bundles_post_ra>
// kernel: tpu_custom_call.1
= control target key start
LH: loop header
LB: loop body
LE: loop exit
PB: predicated region body
PF: predicated region fallthrough
CT: control target
= control target key end

     0   :  { %9 = vsyncpa [#allocation4], 0  ;;  %s380_s0 = inlined_call_operand.hbm [shape: s32[1,128], index: 0, kind: input, shape index: {}]   ;;  %s381_s1 = inlined_call_operand.hbm [shape: f32[128,128], index: 1, kind: input, shape index: {}]   ;;  %s382_s2 = inlined_call_operand.hbm [shape: f32[128,128], index: 2, kind: input, shape index: {}]   ;;  %s383_s3 = inlined_call_operand.vmem [shape: f32[1,128], index: 3, kind: input, shape index: {}]   ;;  %s384_s4 = inlined_call_operand.hbm [shape: f32[8,128], index: 4, kind: output, shape index: {}]  }
   0x1   :  { %10 = vsyncpa [#allocation7], 0  ;;  %s27_s17 = sshll.u32 %s381_s1, 4  ;;  %s28_s17 = int_to_ptr.hbm [resolvable:$true] %s27_s17 }
   0x2   :  { %11 = vsyncpa [#allocation5], 0  ;;  %s329_s18 = smov [#allocation6]   ;;  %s17_s22 = sshll.u32 %s380_s0, 4  ;;  %s18_s22 = int_to_ptr.hbm [resolvable:$true] %s17_s22 }
   0x3   :  { %s29_s19 = sshll.u32 %s329_s18, 4  ;;  %s330_s23 = smov 128   ;;  %s30_s19 = int_to_ptr.vmem [resolvable:$true] %s29_s19 }
   0x4   :  { %s331_s24 = smov 8   ;;  %s332_s25 = smov [#allocation3]  }
   0x5   :  { %35 = dma.hbm_to_vmem [thread:$0]  %s28_s17, 2048, %s30_s19, [#allocation7], %s330_s23, %s330_s23, %s331_s24  }
   0x6   :  { %s19_s26 = sshll.u32 %s332_s25, 4  ;;  %s40_s29 = sshll.u32 %s382_s2, 4  ;;  %s20_s26 = int_to_ptr.vmem [resolvable:$true] %s19_s26  ;;  %s41_s29 = int_to_ptr.hbm [resolvable:$true] %s40_s29 }
   0x7   :  { %22 = dma.hbm_to_vmem [thread:$0]  %s18_s22, 16, %s20_s26, [#allocation4]  }
   0x8   :  { %s333_s1 = smov [#allocation8]  }
   0x9   :  { %s42_s30 = sshll.u32 %s333_s1, 4  ;;  %s43_s30 = int_to_ptr.vmem [resolvable:$true] %s42_s30 }
   0xa   :  { %48 = dma.hbm_to_vmem [thread:$0]  %s41_s29, 2048, %s43_s30, [#allocation7], %s330_s23, %s330_s23, %s331_s24  }
   0xb   :  { %323 = dma.done.wait [#allocation4], 16  }
   0xc   :  { %324 = vsyncadd [#allocation4], 4294967280 }
   0xd   :  { %325 = dma.done.wait [#allocation7], 4096  }
   0xe   :  { %326 = vsyncadd [#allocation7], 4294963200  ;;  %v94_v0 = vld [vmem:[#allocation6 + $0x78] sm:$0xff]  ;;  %v93_v1 = vld [vmem:[#allocation6 + $0x70] sm:$0xff]  ;;  %v68_v9 = vlaneseq  ;;  %v334_v20 = vmov 1.0   ;;  %v335_v21 = vmov 64  }
   0xf   :  { %95 = vmatpush.msra.mxu0 %v94_v0  ;;  %v92_v2 = vld [vmem:[#allocation6 + $0x68] sm:$0xff]  ;;  %v91_v3 = vld [vmem:[#allocation6 + $0x60] sm:$0xff]  ;;  %v90_v4 = vld [vmem:[#allocation6 + $0x58] sm:$0xff]  ;;  %221 = vset.pattern.permute.xlu0 %v335_v21  ;;  %v336_v44 = vmov 65   ;;  %s337_s5 = smov [#allocation9]   ;;  %s199_s9 = sshll.u32 %s384_s4, 4  ;;  %s200_s9 = int_to_ptr.hbm [resolvable:$true] %s199_s9 }
  0x10   :  { %v89_v5 = vld [vmem:[#allocation6 + $0x50] sm:$0xff]  ;;  %v88_v6 = vld [vmem:[#allocation6 + $0x48] sm:$0xff]  ;;  %v87_v7 = vld [vmem:[#allocation6 + $0x40] sm:$0xff]  ;;  %v69_v12 = vshrl.u32 %v68_v9, 7  ;;  %v123_v52 = vand.u32 127, %v68_v9  ;;  %s197_s6 = sshll.u32 %s337_s5, 4  ;;  %s198_s6 = int_to_ptr.vmem [resolvable:$true] %s197_s6 }
  0x11   :  { %96 = vmatpush.msra.mxu0 %v93_v1  ;;  %v86_v8 = vld [vmem:[#allocation6 + $0x38] sm:$0xff]  ;;  %v85_v10 = vld [vmem:[#allocation6 + $0x30] sm:$0xff]  ;;  %v84_v11 = vld [vmem:[#allocation6 + $0x28] sm:$0xff] }
  0x12   :  { %v83_v13 = vld [vmem:[#allocation6 + $0x20] sm:$0xff]  ;;  %v82_v14 = vld [vmem:[#allocation6 + $0x18] sm:$0xff]  ;;  %v73_v16 = vadd.s32 8, %v69_v12  ;;  %v81_v17 = vld [vmem:[#allocation6 + $0x10] sm:$0xff]  ;;  %vm124_vm7 = vcmp.lt.s32.totalorder %v123_v52, 32 }
  0x13   :  { %97 = vmatpush.msra.mxu0 %v92_v2  ;;  %v223_v15 = vld [vmem:[#allocation3] ss:$0 sm:$0xff]  ;;  %v80_v18 = vld [vmem:[#allocation6 + $0x8] sm:$0xff]  ;;  %v79_v19 = vld [vmem:[#allocation6] sm:$0xff] }
  0x14   :  { %vm72_vm0 = vcmp.eq.s32.totalorder %v223_v15, %v69_v12  ;;  %vm74_vm1 = vcmp.eq.s32.totalorder %v223_v15, %v73_v16  ;;  %v166_v22 = vld [vmem:[#allocation8 + $0x78] sm:$0xff]  ;;  %v165_v23 = vld [vmem:[#allocation8 + $0x70] sm:$0xff]  ;;  %v164_v24 = vld [vmem:[#allocation8 + $0x68] sm:$0xff] }
  0x15   :  { %98 = vmatpush.msra.mxu0 %v91_v3  ;;  %vm75_vm2 = vmor %vm72_vm0, %vm74_vm1  ;;  %171 = vmatpush.msra.mxu1 %v166_v22  ;;  %v163_v27 = vld [vmem:[#allocation8 + $0x60] sm:$0xff]  ;;  %v162_v28 = vld [vmem:[#allocation8 + $0x58] sm:$0xff] }
  0x16   :  { %v161_v29 = vld [vmem:[#allocation8 + $0x50] sm:$0xff]  ;;  %v160_v30 = vld [vmem:[#allocation8 + $0x48] sm:$0xff]  ;;  %v159_v32 = vld [vmem:[#allocation8 + $0x40] sm:$0xff] }
  0x17   :  { %99 = vmatpush.msra.mxu0 %v90_v4  ;;  %172 = vmatpush.msra.mxu1 %v165_v23  ;;  %v158_v34 = vld [vmem:[#allocation8 + $0x38] sm:$0xff]  ;;  %v157_v37 = vld [vmem:[#allocation8 + $0x30] sm:$0xff]  ;;  %v156_v45 = vld [vmem:[#allocation8 + $0x28] sm:$0xff] }
  0x18   :  { %v155_v46 = vld [vmem:[#allocation8 + $0x20] sm:$0xff]  ;;  %v154_v47 = vld [vmem:[#allocation8 + $0x18] sm:$0xff]  ;;  %v153_v48 = vld [vmem:[#allocation8 + $0x10] sm:$0xff] }
  0x19   :  { %100 = vmatpush.msra.mxu0 %v89_v5  ;;  %173 = vmatpush.msra.mxu1 %v164_v24  ;;  %v152_v49 = vld [vmem:[#allocation8 + $0x8] sm:$0xff]  ;;  %v151_v50 = vld [vmem:[#allocation8] sm:$0xff]  ;;  %v224_v56 = vld [vmem:[%s383_s3] ss:$0 sm:$0xff] }
  0x1b   :  { %101 = vmatpush.msra.mxu0 %v88_v6  ;;  %174 = vmatpush.msra.mxu1 %v163_v27 }
  0x1d   :  { %102 = vmatpush.msra.mxu0 %v87_v7  ;;  %175 = vmatpush.msra.mxu1 %v162_v28 }
  0x1f   :  { %103 = vmatpush.msra.mxu0 %v86_v8  ;;  %176 = vmatpush.msra.mxu1 %v161_v29 }
  0x21   :  { %104 = vmatpush.msra.mxu0 %v85_v10  ;;  %177 = vmatpush.msra.mxu1 %v160_v30 }
  0x23   :  { %105 = vmatpush.msra.mxu0 %v84_v11  ;;  %178 = vmatpush.msra.mxu1 %v159_v32 }
  0x25   :  { %106 = vmatpush.msra.mxu0 %v83_v13  ;;  %179 = vmatpush.msra.mxu1 %v158_v34 }
  0x27   :  { %107 = vmatpush.msra.mxu0 %v82_v14  ;;  %180 = vmatpush.msra.mxu1 %v157_v37 }
  0x29   :  { %108 = vmatpush.msra.mxu0 %v81_v17  ;;  %181 = vmatpush.msra.mxu1 %v156_v45 }
  0x2b   :  { %109 = vmatpush.msra.mxu0 %v80_v18  ;;  %182 = vmatpush.msra.mxu1 %v155_v46 }
  0x2d   :  { %110 = vmatpush.msra.mxu0 %v79_v19  ;;  %183 = vmatpush.msra.mxu1 %v154_v47 }
  0x2e   :  { %211 = vmatmul.msk.f32.vlgmr.msra.gmra.mxu0 %vm75_vm2, %v334_v20 }
  0x2f   :  { %184 = vmatpush.msra.mxu1 %v153_v48 }
  0x31   :  { %185 = vmatpush.msra.mxu1 %v152_v49 }
  0x33   :  { %186 = vmatpush.msra.mxu1 %v151_v50 }
  0xab   :  { %v112_v25 = vpop.f32.mrf.mxu0 }
  0xac   :  { %v121_v26 = vmax.f32 %v112_v25, 1.0 }
  0xae   :  { %225 = vrcp.f32 %v121_v26  ;;  %v136_v36 = vand.u32 2147483648, %v121_v26  ;;  %v134_v39 = vand.u32 2147483647, %v121_v26  ;;  %vm130_vm4 = vweird.f32 %v121_v26 }
  0xb0   :  { %v137_v41 = vor.u32 1.1754944e-38, %v136_v36  ;;  %vm135_vm6 = vcmp.eq.f32.partialorder %v134_v39, 8.507059e+37 }
  0xb4   :  { %v226_v31 = vpop.eup %225 }
  0xb5   :  { %v126_v33 = vmul.f32 %v226_v31, %v121_v26  ;;  %vm131_vm3 = vweird.f32 %v226_v31 }
  0xb6   :  { %vm132_vm5 = vmor %vm130_vm4, %vm131_vm3 }
  0xb7   :  { %v127_v35 = vsub.f32 1.0, %v126_v33 }
  0xb9   :  { %v128_v38 = vmul.f32 %v226_v31, %v127_v35 }
  0xbb   :  { %v129_v40 = vadd.f32 %v226_v31, %v128_v38 }
  0xbd   :  { %v133_v42 = vsel %vm132_vm5, %v226_v31, %v129_v40 }
  0xbe   :  { %v138_v43 = vsel %vm135_vm6, %v137_v41, %v133_v42 }
  0xbf   :  { %142 = vperm.xlu0 %221, %v138_v43  }
  0xc7   :  { %222 = vset.pattern.permute.xlu0 %v336_v44 }
  0xc8   :  { %146 = vperm.xlu0 %222, %v138_v43  }
 0x131   :  { %v143_v51 = vpop.permute.xlu0 %142 }
 0x13a   :  { %v147_v53 = vpop.permute.xlu0 %146 }
 0x13b   :  { %v149_v54 = vsel %vm124_vm7, %v143_v51, %v147_v53 }
 0x13c   :  { %v150_v55 = vmul.f32 %v149_v54, %v112_v25 }
 0x13e   :  { %187 = vmatmul.f32.vlgmr.msra.gmra.mxu1 %v150_v55 }
 0x1bb   :  { %v188_v57 = vpop.f32.mrf.mxu1 }
 0x1bc   :  { %v189_v58 = vadd.f32 %v224_v56, %v188_v57 }
 0x1be   :  { %191 = vst [vmem:[#allocation9] sm:$0xff] %v189_v58 }
 0x1bf   :  { %202 = dma.vmem_to_hbm [thread:$0]  %s198_s6, 128, %s200_s9, [#allocation5]  }
 0x1c0   :  { %327 = dma.done.wait [#allocation5], 128  }
 0x1c1   :  { %328 = vsyncadd [#allocation5], 4294967168 }
 0x1c2   :  { %207 = vsyncpa [#allocation4], 1 }
 0x1c3   :  { %208 = vsyncpa [#allocation7], 1 }
 0x1c4   :  { %209 = vsyncpa [#allocation5], 1 }

</bundles_post_ra>
